<compile_context>
chip_gen: v5e
topology: v5e:2x2
jax: 0.10.0
libtpu: 0.0.40
codegen_flags: <defaults>
</compile_context>

<pallas_src>
import jax
import jax.numpy as jnp
from jax.experimental import pallas as pl
from jax.experimental.pallas import tpu as pltpu


def _gemm_bn_silu_kernel(p_ref, w_ref, b_ref, o_ref):
    """One (batch, M-tile) grid step.

    p_ref: (1, Kdim, TM)   im2col patches, lane dim = output pixels
    w_ref: (Cout, Kdim)    conv weight with BN scale folded in
    b_ref: (Cout, 1)       folded BN bias = beta - mean * scale
    o_ref: (1, Cout, TM)   lane-dense NCHW-flattened output tile
    """
    acc = jnp.dot(w_ref[...], p_ref[0],
                  preferred_element_type=jnp.float32)      # (Cout, TM) f32 on MXU
    y = acc + b_ref[...]                                    # bias broadcast over lanes
    y = y * jax.nn.sigmoid(y)                               # SiLU, f32 epilogue (EUP)
    o_ref[0] = y.astype(o_ref.dtype)


def _pick_m_tile(m, n):
    """Largest 128-multiple tile that divides M while keeping >=4 grid steps."""
    for t in (512, 256, 128):
        if m % t == 0 and (m // t) * n >= 4:
            return t
    for t in (512, 256, 128):
        if m % t == 0:
            return t
    return m  # full extent fallback (always a legal block dim)


def conv2d_bn_silu(x_nchw, weight_oihw, gamma, beta, running_mean, running_var,
                   *, stride=1, padding=0, eps=1e-5, compute_dtype=None):
    """PyTorch-equivalent forward: SiLU(BN(Conv2d(x))), bias=False, groups=1."""
    n, cin, h, w = x_nchw.shape
    cout, cin_w, kh, kw = weight_oihw.shape
    assert cin == cin_w, "groups != 1 not supported"  # TODO(synk): grouped conv

    oh = (h + 2 * padding - kh) // stride + 1
    ow = (w + 2 * padding - kw) // stride + 1
    kdim = kh * kw * cin
    m = oh * ow

    # --- im2col (wrapper-side glue; pad + slices + concat fuse in XLA) ---------
    if padding > 0:
        xp = jnp.pad(x_nchw, ((0, 0), (0, 0), (padding, padding), (padding, padding)))
    else:
        xp = x_nchw
    cols = []
    for i in range(kh):
        for j in range(kw):
            cols.append(xp[:, :,
                           i:i + (oh - 1) * stride + 1:stride,
                           j:j + (ow - 1) * stride + 1:stride])   # (N, Cin, OH, OW)
    patches = cols[0] if len(cols) == 1 else jnp.concatenate(cols, axis=1)
    patches = patches.reshape(n, kdim, m)        # (N, Kdim, OH*OW); k = (kh,kw,cin)

    # --- BN folding: scale into the weights, bias kept separate ----------------
    scale = gamma / jnp.sqrt(running_var + eps)                       # (Cout,)
    w2d_t = jnp.transpose(weight_oihw, (0, 2, 3, 1)).reshape(cout, kdim)
    w_folded = (w2d_t * scale[:, None]).astype(jnp.float32)           # (Cout, Kdim)
    bias = (beta - running_mean * scale).reshape(cout, 1).astype(jnp.float32)

    if compute_dtype is not None:      # e.g. jnp.bfloat16 on v6e/v7x
        patches = patches.astype(compute_dtype)
        w_folded = w_folded.astype(compute_dtype)

    tm = _pick_m_tile(m, n)
    grid = (n, m // tm)

    out = pl.pallas_call(
        _gemm_bn_silu_kernel,
        out_shape=jax.ShapeDtypeStruct((n, cout, m), x_nchw.dtype),
        grid_spec=pltpu.PrefetchScalarGridSpec(
            num_scalar_prefetch=0,
            grid=grid,
            in_specs=[
                pl.BlockSpec((1, kdim, tm), lambda b, mi: (b, 0, mi)),
                pl.BlockSpec((cout, kdim), lambda b, mi: (0, 0)),
                pl.BlockSpec((cout, 1), lambda b, mi: (0, 0)),
            ],
            out_specs=pl.BlockSpec((1, cout, tm), lambda b, mi: (b, 0, mi)),
        ),
        compiler_params=pltpu.CompilerParams(
            dimension_semantics=("parallel", "parallel"),
            vmem_limit_bytes=32 * 1024 * 1024),
    )(patches, w_folded, bias)

    # Free reshape (row-major compatible); no transpose back to NCHW needed.
    return out.reshape(n, cout, oh, ow)


def _reference(x_nchw, weight_oihw, gamma, beta, mean, var, *, stride, padding, eps=1e-5):
    y = jax.lax.conv_general_dilated(
        x_nchw, weight_oihw,
        window_strides=(stride, stride),
        padding=[(padding, padding), (padding, padding)],
        dimension_numbers=("NCHW", "OIHW", "NCHW"))
    y = (y - mean[None, :, None, None]) / jnp.sqrt(var[None, :, None, None] + eps)
    y = y * gamma[None, :, None, None] + beta[None, :, None, None]
    return y * jax.nn.sigmoid(y)


if __name__ == "__main__":
    N, CIN, H, W, COUT = 2, 4, 16, 16, 8

    key = jax.random.PRNGKey(0)
    k_x, k_w1, k_w3, k_g, k_b, k_m, k_v = jax.random.split(key, 7)

    x = jax.random.normal(k_x, (N, CIN, H, W), dtype=jnp.float32)
    gamma = jax.random.normal(k_g, (COUT,), dtype=jnp.float32) * 0.1 + 1.0
    beta = jax.random.normal(k_b, (COUT,), dtype=jnp.float32) * 0.1
    running_mean = jax.random.normal(k_m, (COUT,), dtype=jnp.float32) * 0.1
    running_var = jax.random.uniform(k_v, (COUT,), dtype=jnp.float32,
                                     minval=0.5, maxval=1.5)

    # (name, ksize, stride); pad = (ksize - 1) // 2 as in BaseConv.
    cases = [
        ("conv1 1x1 s1", 1, 1),   # the module's conv1 config
        ("3x3 s1", 3, 1),
        ("3x3 s2", 3, 2),         # stride>1 path (review correctness request)
    ]
    for name, k, stride in cases:
        pad = (k - 1) // 2
        kw_key = k_w1 if k == 1 else k_w3
        weight = jax.random.normal(kw_key, (COUT, CIN, k, k), dtype=jnp.float32) * 0.1
        out = conv2d_bn_silu(x, weight, gamma, beta, running_mean, running_var,
                             stride=stride, padding=pad)
        out = jax.block_until_ready(out)
        ref = _reference(x, weight, gamma, beta, running_mean, running_var,
                         stride=stride, padding=pad)
        assert out.shape == ref.shape, f"shape mismatch ({name})"
        assert jnp.allclose(out, ref, atol=1e-4, rtol=1e-4), f"mismatch vs reference ({name})"

    # bf16 input/weight path (v6e/v7x MXU), f32 accumulation + f32 epilogue.
    weight = jax.random.normal(k_w3, (COUT, CIN, 3, 3), dtype=jnp.float32) * 0.1
    out_bf16 = conv2d_bn_silu(x, weight, gamma, beta, running_mean, running_var,
                              stride=1, padding=1, compute_dtype=jnp.bfloat16)
    out_bf16 = jax.block_until_ready(out_bf16)
    ref = _reference(x, weight, gamma, beta, running_mean, running_var,
                     stride=1, padding=1)
    assert jnp.allclose(out_bf16, ref, atol=1e-1, rtol=1e-1), "bf16 mismatch vs reference"

    print("KERNEL_OK")
</pallas_src>

<mosaic_0001>
module attributes {stable_mosaic.version = 11 : i64} {
  func.func @_gemm_bn_silu_kernel(%arg0: i32, %arg1: i32, %arg2: memref<1x4x128xf32, #tpu.memory_space<vmem>>, %arg3: memref<8x4xf32, #tpu.memory_space<vmem>>, %arg4: memref<8x1xf32, #tpu.memory_space<vmem>>, %arg5: memref<1x8x128xf32, #tpu.memory_space<vmem>>) attributes {dimension_semantics = [#tpu.dimension_semantics<parallel>, #tpu.dimension_semantics<parallel>], iteration_bounds = array<i64: 2, 2>, scalar_prefetch = 0 : i64, scratch_operands = 0 : i64, tpu.core_type = #tpu.core_type<tc>, window_params = [{transform_indices = @transform_0, window_bounds = array<i64: 1, 4, 128>}, {pipeline_mode = #tpu.pipeline_mode<synchronous>, transform_indices = @transform_1, window_bounds = array<i64: 8, 4>}, {pipeline_mode = #tpu.pipeline_mode<synchronous>, transform_indices = @transform_2, window_bounds = array<i64: 8, 1>}, {transform_indices = @transform_3, window_bounds = array<i64: 1, 8, 128>}]} {
    %c0 = arith.constant 0 : index
    %c0_0 = arith.constant 0 : index
    %0 = vector.load %arg3[%c0, %c0_0] : memref<8x4xf32, #tpu.memory_space<vmem>>, vector<8x4xf32>
    %c0_1 = arith.constant 0 : index
    %c0_2 = arith.constant 0 : index
    %c0_3 = arith.constant 0 : index
    %1 = vector.load %arg2[%c0_1, %c0_2, %c0_3] : memref<1x4x128xf32, #tpu.memory_space<vmem>>, vector<1x4x128xf32>
    %2 = vector.shape_cast %1 : vector<1x4x128xf32> to vector<4x128xf32>
    %cst = arith.constant dense<0.000000e+00> : vector<8x128xf32>
    %3 = tpu.matmul %0, %2, %cst {dimension_numbers = #tpu.dot_dimension_numbers<[1], [0], [0], [1], [0, 0, 1, 1], [], []>} : vector<8x4xf32>, vector<4x128xf32>, vector<8x128xf32> -> vector<8x128xf32>
    %c0_4 = arith.constant 0 : index
    %c0_5 = arith.constant 0 : index
    %4 = vector.load %arg4[%c0_4, %c0_5] : memref<8x1xf32, #tpu.memory_space<vmem>>, vector<8x1xf32>
    %5 = vector.broadcast %4 : vector<8x1xf32> to vector<8x128xf32>
    %6 = arith.addf %3, %5 : vector<8x128xf32>
    %7 = arith.negf %6 : vector<8x128xf32>
    %8 = math.exp %7 : vector<8x128xf32>
    %cst_6 = arith.constant 1.000000e+00 : f32
    %9 = vector.broadcast %cst_6 : f32 to vector<8x128xf32>
    %10 = arith.addf %9, %8 : vector<8x128xf32>
    %11 = arith.divf %9, %10 : vector<8x128xf32>
    %12 = arith.mulf %6, %11 : vector<8x128xf32>
    %c0_7 = arith.constant 0 : index
    %c0_8 = arith.constant 0 : index
    %c0_9 = arith.constant 0 : index
    %13 = vector.load %arg5[%c0_7, %c0_8, %c0_9] : memref<1x8x128xf32, #tpu.memory_space<vmem>>, vector<1x8x128xf32>
    %14 = vector.shape_cast %13 : vector<1x8x128xf32> to vector<8x128xf32>
    %15 = vector.shape_cast %12 : vector<8x128xf32> to vector<1x8x128xf32>
    tpu.vector_store %arg5[%c0_7, %c0_8, %c0_9], %15 {strides = array<i32>} : memref<1x8x128xf32, #tpu.memory_space<vmem>>, vector<1x8x128xf32>,
    return
  }
  func.func @transform_0(%arg0: i32, %arg1: i32) -> (i32, i32, i32) {
    %c0_i32 = arith.constant 0 : i32
    %c0_i32_0 = arith.constant 0 : i32
    return %arg0, %c0_i32, %arg1 : i32, i32, i32
  }
  func.func @transform_1(%arg0: i32, %arg1: i32) -> (i32, i32) {
    %c0_i32 = arith.constant 0 : i32
    %c0_i32_0 = arith.constant 0 : i32
    %c0_i32_1 = arith.constant 0 : i32
    return %c0_i32, %c0_i32_0 : i32, i32
  }
  func.func @transform_2(%arg0: i32, %arg1: i32) -> (i32, i32) {
    %c0_i32 = arith.constant 0 : i32
    %c0_i32_0 = arith.constant 0 : i32
    %c0_i32_1 = arith.constant 0 : i32
    return %c0_i32, %c0_i32_0 : i32, i32
  }
  func.func @transform_3(%arg0: i32, %arg1: i32) -> (i32, i32, i32) {
    %c0_i32 = arith.constant 0 : i32
    %c0_i32_0 = arith.constant 0 : i32
    return %arg0, %c0_i32, %arg1 : i32, i32, i32
  }
}

</mosaic_0001>

<bundles_post_ra>
// kernel: tpu_custom_call.1
= control target key start
LH: loop header
LB: loop body
LE: loop exit
PB: predicated region body
PF: predicated region fallthrough
CT: control target
= control target key end

     0   :  { %8 = vsyncpa [#allocation3], 0  ;;  %s685_s0 = inlined_call_operand.vmem [shape: f32[2,4,256], index: 0, kind: input, shape index: {}]   ;;  %s686_s1 = inlined_call_operand.vmem [shape: f32[8,4], index: 1, kind: input, shape index: {}]   ;;  %s687_s2 = inlined_call_operand.vmem [shape: f32[8,1], index: 2, kind: input, shape index: {}]   ;;  %s688_s3 = inlined_call_operand.hbm [shape: f32[2,8,256], index: 3, kind: output, shape index: {}]  }
   0x1   :  { %10 = vsyncpa [#allocation3 + $0x1], 0  ;;  %s557_s12 = smov 0   ;;  %s559_s13 = smov 0  }
   0x2   :  { %s561_s14 = smov 0   ;;  %s563_s15 = smov 0  }
   0x3   :  { %s565_s16 = smov 0   ;;  %s567_s17 = smov 0  }
   0x4   :  { %s569_s18 = smov 0   ;;  %s571_s19 = smov 0  }
   0x5 LB: > { %s347_s20 = sadd.s32 4294967295, %s534_s19   ;;  %s348_s21 = sadd.s32 4294967294, %s534_s19   ;;  %s534_s19 = sphi %s571_s19, %s16_s19   ;;  %s530_s18 = sphi %s569_s18, %s697_s18   ;;  %s526_s17 = sphi %s567_s17, %s696_s17   ;;  %s522_s16 = sphi %s565_s16, %s695_s16   ;;  %s518_s15 = sphi %s563_s15, %s694_s15   ;;  %s514_s14 = sphi %s561_s14, %s693_s14   ;;  %s510_s13 = sphi %s559_s13, %s692_s13   ;;  %s506_s12 = sphi %s557_s12, %s691_s12  }
   0x6   : > { %s25_s22 = sadd.s32 1, %s526_s17  ;;  %s28_s23 = sadd.s32 1, %s530_s18 }
   0x7   : > { %p26_p0 = scmp.ge.s32.totalorder %s25_s22, 2  ;;  %p117_p1 = scmp.ne.s32.totalorder %s514_s14, %s510_s13 }
   0x8   : > { %p118_p2 = scmp.eq.s32.totalorder %s347_s20, 3  ;;  %p123_p5 = scmp.ne.s32.totalorder %s510_s13, %s506_s12 }
   0x9   : > { %s699_s22 = smov (%p26_p0, %s25_s22), 0  ;;  %s701_s23 = smov (!%p26_p0, %s28_s23), %s530_s18 }
   0xa   : > { %s103_s24 = ssub.s32 %s526_s17, %s699_s22  ;;  %p608_p3 = por %p118_p2, %p117_p1 }
   0xb   : > { %p30_p4 = scmp.ge.s32.totalorder %s701_s23, 2  ;;  %p124_p6 = scmp.eq.s32.totalorder %s348_s21, 3 }
   0xc   : > { %p351_p7 = scmp.ge.s32.totalorder %s534_s19, 1  ;;  %p159_p9 = scmp.lt.s32.totalorder %s534_s19, 5 }
   0xd   : > { %s703_s23 = smov (%p30_p4, %s701_s23), 0  ;;  %p617_p8 = por %p124_p6, %p123_p5 }
   0xe   : > { %s102_s27 = ssub.s32 %s530_s18, %s703_s23  ;;  %s107_s28 = sadd.s32 1, %s514_s14 }
   0xf   : > { %s104_s29 = sor.u32 %s103_s24, %s102_s27  ;;  %p160_p10 = pnand %p351_p7, %p159_p9 }
  0x10   : > { %p105_p11 = scmp.eq.s32.totalorder %s104_s29, 0  ;;  %p186_p12 = scmp.lt.s32.totalorder (!%p160_p10), %s522_s16, 1 }
  0x11   : > { %163 = sbr.rel (%p160_p10) target bundleno = 191 (0xbf), region = 32  ;;  %p188_p13 = scmp.lt.s32.totalorder (!%p160_p10), %s518_s15, 1 }
  0x12   : > { %s626_s30 = scalar_select %p105_p11, %s514_s14, %s107_s28  }
  0x13   : > { %s359_s28 = sshll.u32 (!%p160_p10), %s522_s16, 1  ;;  %s183_s29 = sand.u32 (!%p160_p10), 1, %s510_s13  }
  0x14   : > { %s262_s4 = sadd.s32 (!%p160_p10), %s518_s15, %s359_s28  ;;  %s352_s5 = sshll.u32 (!%p160_p10), %s183_s29, 3 }
  0x15   : > { %s252_s11 = scalar_lea.sflag (!%p160_p10), [#allocation3], %s183_s29  ;;  %s460_s28 = scalar_lea.hbm (!%p160_p10), %s688_s3, 32 }
  0x16   : > { %v536_v0 = vmov 0   ;;  %v196_v1 = vld [vmem:[%s687_s2] sm:$0xff]  ;;  %s187_s6 = scalar_select %p186_p12, %s522_s16, 1  ;;  %vm206_vm0 = vcmask 1043456   ;;  %vm202_vm1 = vcmask 31744  }
  0x17   : > { %435 = vset.pattern.permute.xlu0 %v536_v0  ;;  %s189_s7 = scalar_select %p188_p13, %s518_s15, 1  ;;  %v194_v2 = vld [vmem:[%s686_s1] sm:$0xff] }
  0x18   : > { %199 = vperm.xlu0 %435, %v196_v1   ;;  %s353_s8 = sshll.u32 %s187_s6, 1  ;;  %s360_s6 = sshll.u32 %s262_s4, 3 }
  0x19   : > { %s191_s9 = sadd.s32 %s353_s8, %s189_s7  ;;  %s185_s16 = scalar_lea.vmem [#allocation2], %s352_s5 }
  0x1a   : > { %s354_s10 = sshll.u32 %s191_s9, 2  ;;  %s264_s9 = scalar_lea.hbm %s688_s3, %s360_s6 }
  0x1b   : > { %s193_s21 = scalar_lea.vmem %s685_s0, %s354_s10  ;;  %s266_s15 = sshll.u32 %s185_s16, 4  ;;  %s267_s15 = int_to_ptr.vmem [resolvable:$true] %s266_s15 }
  0x1c   : > { %v195_v3 = vld [vmem:[%s193_s21] sm:$0xf]  ;;  %s268_s10 = sshll.u32 %s264_s9, 4  ;;  %s269_s10 = int_to_ptr.hbm [resolvable:$true] %s268_s10 }
  0x1d   : > { %355 = vmatpush.msk.msra.mxu0 %vm206_vm0, %v195_v3  ;;  %s454_s20 = sshra.s32 %s269_s10, 4  ;;  %s455_s20 = int_to_ptr.hbm [resolvable:$true] %s454_s20 }
  0x1e   : > { %356 = vmatmul.msk.f32.vlgmr.msra.gmra.mxu0 %vm202_vm1, %v194_v2  ;;  %s456_s21 = scalar_lea.hbm %s455_s20, 8  ;;  %p461_p4 = scmp.lt.s32.totalorder %s455_s20, %s688_s3 }
  0x1f   : > { %p457_p0 = scmp.ne.s32.totalorder %s455_s20, %s456_s21  ;;  %p462_p5 = scmp.lt.s32.totalorder %s460_s28, %s456_s21 }
  0x21   : > { %p458_p1 = pnand %p457_p0, %p608_p3  ;;  %p463_p6 = por %p462_p5, %p461_p4 }
  0x23   : > { %p459_p2 = pneg %p458_p1 }
  0x25   : > { %p464_p7 = pnand %p463_p6, %p459_p2 }
  0x8a   : > { %v200_v4 = vpop.permute.xlu0 %199 }
  0x9b   : > { %v227_v5 = vpop.f32.mrf.mxu0 }
  0x9c   : > { %v228_v6 = vadd.f32 %v227_v5, %v200_v4 }
  0x9e   : > { %v357_v7 = vmul.f32 -1.442695, %v228_v6 }
  0xa0   : > { %436 = vpow2.f32 %v357_v7 }
  0xa6   : > { %v437_v8 = vpop.eup %436 }
  0xa7   : > { %v233_v9 = vadd.f32 1.0, %v437_v8 }
  0xa9   : > { %438 = vrcp.f32 %v233_v9  ;;  %v245_v13 = vand.u32 2147483648, %v233_v9  ;;  %v243_v15 = vand.u32 2147483647, %v233_v9  ;;  %vm239_vm3 = vweird.f32 %v233_v9 }
  0xab   : > { %v246_v17 = vor.u32 1.1754944e-38, %v245_v13  ;;  %vm244_vm5 = vcmp.eq.f32.partialorder %v243_v15, 8.507059e+37 }
  0xaf   : > { %v439_v10 = vpop.eup %438 }
  0xb0   : > { %v235_v11 = vmul.f32 %v439_v10, %v233_v9  ;;  %vm240_vm2 = vweird.f32 %v439_v10 }
  0xb1   : > { %vm241_vm4 = vmor %vm239_vm3, %vm240_vm2 }
  0xb2   : > { %v236_v12 = vsub.f32 1.0, %v235_v11 }
  0xb4   : > { %v237_v14 = vmul.f32 %v439_v10, %v236_v12 }
  0xb6   : > { %v238_v16 = vadd.f32 %v439_v10, %v237_v14 }
  0xb8   : > { %v242_v18 = vsel %vm241_vm4, %v439_v10, %v238_v16 }
  0xb9   : > { %v247_v19 = vsel %vm244_vm5, %v246_v17, %v242_v18 }
  0xba   : > { %v249_v20 = vmul.f32 %v247_v19, %v228_v6 }
  0xbc   : > { %250 = vst [vmem:[%s185_s16] sm:$0xff] %v249_v20 }
  0xbd   : > { %467 = shalt.err (!%p464_p7)
}
  0xbe   : > { %363 = dma.vmem_to_hbm [thread:$0]  (%p608_p3), %s267_s15, 128, %s269_s10, %s252_s11  }
  0xbf PF: > { %p369_p9 = scmp.ge.s32.totalorder %s534_s19, 2  ;;  %s280_s29 = sand.u32 1, %s506_s12  }
  0xc0   : > { %s281_s6 = scalar_lea.sflag [#allocation3], %s280_s29 }
  0xc1   : > { %p366_p10 = pnand %p369_p9, %p617_p8 }
  0xc3   : > { %p367_p11 = pneg %p366_p10 }
  0xc5   : > { %501 = dma.done.wait (%p367_p11), %s281_s6, 128  }
  0xc6   : > { %503 = vsyncadd (%p367_p11), %s281_s6, 4294967168  ;;  %s16_s19 = sadd.s32 1, %s534_s19   ;;  %s691_s12 = smov %s510_s13 }
  0xc7   : > { %p13_p12 = scmp.ge.s32.totalorder %s16_s19, 6   ;;  %s692_s13 = smov %s514_s14 }
  0xc8   : > { %s693_s14 = smov %s626_s30  ;;  %s694_s15 = smov %s526_s17 }
  0xc9   : > { %s695_s16 = smov %s530_s18  ;;  %s696_s17 = smov %s699_s22 }
  0xca   : > { %s697_s18 = smov %s703_s23  ;;  %15 = sbr.rel (!%p13_p12) target bundleno = 5 (0x5), region = 67 }
  0xcf   :  { %287 = vsyncpa [#allocation3], 1 }
  0xd0   :  { %289 = vsyncpa [#allocation3 + $0x1], 1 }

</bundles_post_ra>
